<compile_context>
chip_gen: v7x
topology: tpu7x:2x2x1
jax: 0.10.0
libtpu: 0.0.40
codegen_flags: <defaults>
</compile_context>

<pallas_src>
import math

import numpy as np
import jax
import jax.numpy as jnp
from jax.experimental import pallas as pl
from jax.experimental.pallas import tpu as pltpu


def _bilinear_matrix(out_size: int, in_size: int) -> np.ndarray:
    """Interpolation matrix A (out_size, in_size) for align_corners=True."""
    A = np.zeros((out_size, in_size), dtype=np.float32)
    if out_size == 1 or in_size == 1:
        A[:, 0] = 1.0
        return A
    scale = (in_size - 1) / (out_size - 1)
    for i in range(out_size):
        src = i * scale
        lo = min(int(np.floor(src)), in_size - 1)
        hi = min(lo + 1, in_size - 1)
        frac = src - lo
        A[i, lo] += 1.0 - frac
        A[i, hi] += frac
    return A


def _padded_interp_matrix(out_total: int, pad_before: int,
                          up_size: int, in_size: int) -> np.ndarray:
    """(out_total, in_size) matrix: bilinear rows placed at
    [pad_before, pad_before + up_size); zero rows for padding; rows falling
    outside [0, out_total) are dropped (crop / negative pad)."""
    A = _bilinear_matrix(up_size, in_size)
    M = np.zeros((out_total, in_size), dtype=np.float32)
    for r in range(out_total):
        u = r - pad_before
        if 0 <= u < up_size:
            M[r, :] = A[u, :]
    return M


def _vmem_budget_bytes():
    """(tile budget, scoped vmem limit) -- chip aware, safe fallback."""
    phys = None
    try:
        info = pltpu.get_tpu_info()
        phys = getattr(info, "vmem_capacity_bytes", None)
    except Exception:
        phys = None
    if not phys:
        phys = 64 << 20                      # conservative: v7x-sized VMEM
    budget = max(8 << 20, min(phys // 4, 32 << 20))   # ~32 MiB v5e/v6e, ~16 MiB v7x
    limit = int(min(phys * 3 // 4, 96 << 20))         # scoped limit for CompilerParams
    return budget, limit


def _choose_bc(N, C1, C2, H, W, Hout, Wout, itemsize, vmem_budget,
               min_steps=4) -> int:
    """Largest channel block dividing both C1 and C2 that fits the VMEM budget,
    backed off (if possible) so the grid keeps >= min_steps steps for the two
    v7x TensorCores."""
    g = math.gcd(C1, C2)

    def footprint(bc):
        io = 2 * bc * (H * W + 2 * Hout * Wout) * itemsize           # dbl-buffered blocks
        consts = 2 * 4 * (W * Wout + Hout * H)                       # f32 interp matrices
        scratch = 4 * bc * (H * W + H * Wout + Hout * H + Hout * Wout)  # f32 intermediates
        return io + consts + scratch

    divisors = [d for d in range(1, g + 1) if g % d == 0 and footprint(d) <= vmem_budget]
    if not divisors:
        divisors = [1]
    good = [d for d in divisors if N * ((C1 + C2) // d) >= min_steps]
    return max(good) if good else max(divisors)


def up_forward(x1: jax.Array, x2: jax.Array) -> jax.Array:
    """Reproduces Up.forward: 2x bilinear upsample of x1 (align_corners=True),
    pad/crop to x2's spatial size (with the module's exact pad arithmetic),
    concat [x2, x1_up] along channels."""
    N, C1, H, W = x1.shape
    N2, C2, Hout, Wout = x2.shape
    assert N == N2, "batch mismatch"
    assert x1.dtype == x2.dtype, "dtype mismatch"
    dtype = x1.dtype
    itemsize = jnp.dtype(dtype).itemsize

    Ho, Wo = 2 * H, 2 * W

    # Static pad arithmetic (matches the torch module exactly, including the
    # diffX-in-the-diffY-term quirk of the original code).
    diffY = Hout - Ho
    diffX = Wout - Wo
    pad_left = int(np.trunc(diffX / 2))
    pad_right = diffX - pad_left
    pad_top = int(np.trunc(diffY / 2))
    pad_bottom = diffY - int(np.trunc(diffX / 2))
    if Ho + pad_top + pad_bottom != Hout or Wo + pad_left + pad_right != Wout:
        # In torch this configuration would fail at torch.cat as well.
        raise ValueError("inconsistent pad amounts: padded x1 != x2 spatial size")

    # Pad/crop baked into the interpolation matrices (f32, align_corners=True).
    A_h_pad = jnp.asarray(
        np.ascontiguousarray(_padded_interp_matrix(Hout, pad_top, Ho, H)),
        dtype=jnp.float32)                                           # (Hout, H)
    A_w_pad_T = jnp.asarray(
        np.ascontiguousarray(_padded_interp_matrix(Wout, pad_left, Wo, W).T),
        dtype=jnp.float32)                                           # (W, Wout)

    vmem_budget, vmem_limit = _vmem_budget_bytes()
    BC = _choose_bc(N, C1, C2, H, W, Hout, Wout, itemsize, vmem_budget)
    G2 = C2 // BC            # skip-connection copy blocks
    G1 = C1 // BC            # upsample blocks
    G = G2 + G1
    Ct = C1 + C2

    def kernel(awt_ref, ah_ref, x2_ref, x1_ref, o_ref):
        j = pl.program_id(1)

        @pl.when(j < G2)
        def _copy_skip():
            # Pure bandwidth: stream the x2 block straight into its output slot.
            o_ref[...] = x2_ref[...]

        @pl.when(j >= G2)
        def _upsample():
            # Width interp: one big (BC*H, W) @ (W, Wout) MXU matmul, f32.
            # (H is a multiple of 8 in the target net, so the reshapes are
            # tile-aligned relabelings.)
            x = x1_ref[...].astype(jnp.float32).reshape(BC * H, W)
            xw = jnp.dot(x, awt_ref[...], preferred_element_type=jnp.float32)
            xw = xw.reshape(BC, H, Wout)
            # Height interp: batched matmul over BC channels (no block-diagonal
            # kron -> FLOPs/VMEM independent of BC^2), kept in f32.
            ah = jnp.broadcast_to(ah_ref[...], (BC, Hout, H))
            up = jax.lax.dot_general(
                ah, xw,
                dimension_numbers=(((2,), (1,)), ((0,), (0,))),
                preferred_element_type=jnp.float32)                  # (BC, Hout, Wout)
            # Pad/crop already encoded in A_*_pad -> single lane-dense store.
            o_ref[...] = up.astype(o_ref.dtype)

    flops = 2 * N * C1 * H * Wout * (W + Hout)
    bytes_accessed = (itemsize * N * (C1 * H * W + C2 * Hout * Wout + Ct * Hout * Wout)
                      + 4 * (W * Wout + Hout * H))

    out = pl.pallas_call(
        kernel,
        out_shape=jax.ShapeDtypeStruct((N, Ct, Hout, Wout), dtype),
        grid_spec=pltpu.PrefetchScalarGridSpec(
            num_scalar_prefetch=0,
            grid=(N, G),
            in_specs=[
                pl.BlockSpec((W, Wout), lambda n, j: (0, 0)),
                pl.BlockSpec((Hout, H), lambda n, j: (0, 0)),
                # Clamped index maps: the resident block is not re-fetched
                # during the "other" phase.
                pl.BlockSpec((None, BC, Hout, Wout),
                             lambda n, j: (n, jnp.minimum(j, G2 - 1), 0, 0)),
                pl.BlockSpec((None, BC, H, W),
                             lambda n, j: (n, jnp.maximum(j - G2, 0), 0, 0)),
            ],
            out_specs=pl.BlockSpec((None, BC, Hout, Wout),
                                   lambda n, j: (n, j, 0, 0)),
        ),
        compiler_params=pltpu.CompilerParams(
            dimension_semantics=("parallel", "parallel"),
            vmem_limit_bytes=vmem_limit),
        cost_estimate=pl.CostEstimate(
            flops=flops, transcendentals=0, bytes_accessed=bytes_accessed),
    )(A_w_pad_T, A_h_pad, x2, x1)
    return out


def _reference_up_forward(x1, x2) -> np.ndarray:
    """Pure-numpy reference (matrix form of bilinear align_corners=True) for
    non-negative symmetric-ish pads (covers the test shapes)."""
    x1 = np.asarray(x1, dtype=np.float64)
    x2 = np.asarray(x2, dtype=np.float64)
    N, C1, H, W = x1.shape
    _, _, Hout, Wout = x2.shape
    Ah = _bilinear_matrix(2 * H, H).astype(np.float64)
    Aw = _bilinear_matrix(2 * W, W).astype(np.float64)
    up = np.einsum("oh,nchw,pw->ncop", Ah, x1, Aw)
    p_t = int(np.trunc((Hout - 2 * H) / 2))
    p_l = int(np.trunc((Wout - 2 * W) / 2))
    padded = np.zeros((N, C1, Hout, Wout), dtype=np.float64)
    padded[:, :, p_t:p_t + 2 * H, p_l:p_l + 2 * W] = up
    return np.concatenate([x2, padded], axis=1)


if __name__ == "__main__":
    key = jax.random.PRNGKey(0)
    k1, k2, k3, k4 = jax.random.split(key, 4)

    # Case 1: exact 2x (no padding) -- the common UNet decoder configuration.
    N, C1, H, W, C2 = 2, 4, 16, 16, 4
    x1 = jax.random.normal(k1, (N, C1, H, W), dtype=jnp.float32)
    x2 = jax.random.normal(k2, (N, C2, 2 * H, 2 * W), dtype=jnp.float32)
    out = jax.block_until_ready(jax.jit(up_forward)(x1, x2))
    assert out.shape == (N, C1 + C2, 2 * H, 2 * W), out.shape
    np.testing.assert_allclose(np.asarray(out, dtype=np.float64),
                               _reference_up_forward(x1, x2),
                               rtol=1e-4, atol=1e-4)

    # Case 2: larger skip tensor -> exercises the baked-pad path.
    Np, C1p, Hp, Wp, C2p, Hs, Ws = 1, 2, 8, 8, 2, 20, 20
    y1 = jax.random.normal(k3, (Np, C1p, Hp, Wp), dtype=jnp.float32)
    y2 = jax.random.normal(k4, (Np, C2p, Hs, Ws), dtype=jnp.float32)
    outp = jax.block_until_ready(jax.jit(up_forward)(y1, y2))
    assert outp.shape == (Np, C1p + C2p, Hs, Ws), outp.shape
    np.testing.assert_allclose(np.asarray(outp, dtype=np.float64),
                               _reference_up_forward(y1, y2),
                               rtol=1e-4, atol=1e-4)

    print("KERNEL_OK")
</pallas_src>

<mosaic_0001>
module attributes {stable_mosaic.version = 11 : i64} {
  func.func @kernel(%arg0: i32, %arg1: i32, %arg2: memref<16x32xf32, #tpu.memory_space<vmem>>, %arg3: memref<32x16xf32, #tpu.memory_space<vmem>>, %arg4: memref<1x4x32x32xf32, #tpu.memory_space<vmem>>, %arg5: memref<1x4x16x16xf32, #tpu.memory_space<vmem>>, %arg6: memref<1x4x32x32xf32, #tpu.memory_space<vmem>>) attributes {dimension_semantics = [#tpu.dimension_semantics<parallel>, #tpu.dimension_semantics<parallel>], iteration_bounds = array<i64: 2, 2>, scalar_prefetch = 0 : i64, scratch_operands = 0 : i64, tpu.core_type = #tpu.core_type<tc>, window_params = [{pipeline_mode = #tpu.pipeline_mode<synchronous>, transform_indices = @transform_0, window_bounds = array<i64: 16, 32>}, {pipeline_mode = #tpu.pipeline_mode<synchronous>, transform_indices = @transform_1, window_bounds = array<i64: 32, 16>}, {transform_indices = @transform_2, window_bounds = array<i64: 1, 4, 32, 32>}, {transform_indices = @transform_3, window_bounds = array<i64: 1, 4, 16, 16>}, {transform_indices = @transform_4, window_bounds = array<i64: 1, 4, 32, 32>}]} {
    %c1_i32 = arith.constant 1 : i32
    %0 = arith.cmpi slt, %arg1, %c1_i32 : i32
    %1 = arith.extui %0 : i1 to i32
    %c0_i32 = arith.constant 0 : i32
    %2 = arith.cmpi ne, %1, %c0_i32 : i32
    scf.if %2 {
      %c0 = arith.constant 0 : index
      %c0_2 = arith.constant 0 : index
      %c0_3 = arith.constant 0 : index
      %c0_4 = arith.constant 0 : index
      %6 = vector.load %arg4[%c0, %c0_2, %c0_3, %c0_4] : memref<1x4x32x32xf32, #tpu.memory_space<vmem>>, vector<1x4x32x32xf32>
      %7 = vector.shape_cast %6 : vector<1x4x32x32xf32> to vector<4x32x32xf32>
      %c0_5 = arith.constant 0 : index
      %c0_6 = arith.constant 0 : index
      %c0_7 = arith.constant 0 : index
      %c0_8 = arith.constant 0 : index
      %8 = vector.load %arg6[%c0_5, %c0_6, %c0_7, %c0_8] : memref<1x4x32x32xf32, #tpu.memory_space<vmem>>, vector<1x4x32x32xf32>
      %9 = vector.shape_cast %8 : vector<1x4x32x32xf32> to vector<4x32x32xf32>
      %10 = vector.shape_cast %7 : vector<4x32x32xf32> to vector<1x4x32x32xf32>
      tpu.vector_store %arg6[%c0_5, %c0_6, %c0_7, %c0_8], %10 {strides = array<i32>} : memref<1x4x32x32xf32, #tpu.memory_space<vmem>>, vector<1x4x32x32xf32>,
    } else {
    }
    %c1_i32_0 = arith.constant 1 : i32
    %3 = arith.cmpi sge, %arg1, %c1_i32_0 : i32
    %4 = arith.extui %3 : i1 to i32
    %c0_i32_1 = arith.constant 0 : i32
    %5 = arith.cmpi ne, %4, %c0_i32_1 : i32
    scf.if %5 {
      %c0 = arith.constant 0 : index
      %c0_2 = arith.constant 0 : index
      %c0_3 = arith.constant 0 : index
      %c0_4 = arith.constant 0 : index
      %6 = vector.load %arg5[%c0, %c0_2, %c0_3, %c0_4] : memref<1x4x16x16xf32, #tpu.memory_space<vmem>>, vector<1x4x16x16xf32>
      %7 = vector.shape_cast %6 : vector<1x4x16x16xf32> to vector<4x16x16xf32>
      %8 = vector.shape_cast %7 : vector<4x16x16xf32> to vector<64x16xf32>
      %c0_5 = arith.constant 0 : index
      %c0_6 = arith.constant 0 : index
      %9 = vector.load %arg2[%c0_5, %c0_6] : memref<16x32xf32, #tpu.memory_space<vmem>>, vector<16x32xf32>
      %cst = arith.constant dense<0.000000e+00> : vector<64x32xf32>
      %10 = tpu.matmul %8, %9, %cst {dimension_numbers = #tpu.dot_dimension_numbers<[1], [0], [0], [1], [0, 0, 1, 1], [], []>} : vector<64x16xf32>, vector<16x32xf32>, vector<64x32xf32> -> vector<64x32xf32>
      %11 = vector.shape_cast %10 : vector<64x32xf32> to vector<4x16x32xf32>
      %c0_7 = arith.constant 0 : index
      %c0_8 = arith.constant 0 : index
      %12 = vector.load %arg3[%c0_7, %c0_8] : memref<32x16xf32, #tpu.memory_space<vmem>>, vector<32x16xf32>
      %13 = vector.shape_cast %12 : vector<32x16xf32> to vector<1x32x16xf32>
      %14 = vector.broadcast %13 : vector<1x32x16xf32> to vector<4x32x16xf32>
      %cst_9 = arith.constant dense<0.000000e+00> : vector<4x32x32xf32>
      %15 = tpu.matmul %14, %11, %cst_9 {dimension_numbers = #tpu.dot_dimension_numbers<[2], [1], [1], [2], [0, 0, 0, 1, 1, 2], [0], [0]>} : vector<4x32x16xf32>, vector<4x16x32xf32>, vector<4x32x32xf32> -> vector<4x32x32xf32>
      %c0_10 = arith.constant 0 : index
      %c0_11 = arith.constant 0 : index
      %c0_12 = arith.constant 0 : index
      %c0_13 = arith.constant 0 : index
      %16 = vector.load %arg6[%c0_10, %c0_11, %c0_12, %c0_13] : memref<1x4x32x32xf32, #tpu.memory_space<vmem>>, vector<1x4x32x32xf32>
      %17 = vector.shape_cast %16 : vector<1x4x32x32xf32> to vector<4x32x32xf32>
      %18 = vector.shape_cast %15 : vector<4x32x32xf32> to vector<1x4x32x32xf32>
      tpu.vector_store %arg6[%c0_10, %c0_11, %c0_12, %c0_13], %18 {strides = array<i32>} : memref<1x4x32x32xf32, #tpu.memory_space<vmem>>, vector<1x4x32x32xf32>,
    } else {
    }
    return
  }
  func.func @transform_0(%arg0: i32, %arg1: i32) -> (i32, i32) {
    %c0_i32 = arith.constant 0 : i32
    %c0_i32_0 = arith.constant 0 : i32
    %c0_i32_1 = arith.constant 0 : i32
    return %c0_i32, %c0_i32_0 : i32, i32
  }
  func.func @transform_1(%arg0: i32, %arg1: i32) -> (i32, i32) {
    %c0_i32 = arith.constant 0 : i32
    %c0_i32_0 = arith.constant 0 : i32
    %c0_i32_1 = arith.constant 0 : i32
    return %c0_i32, %c0_i32_0 : i32, i32
  }
  func.func @transform_2(%arg0: i32, %arg1: i32) -> (i32, i32, i32, i32) {
    %c0_i32 = arith.constant 0 : i32
    %0 = arith.minsi %arg1, %c0_i32 : i32
    %c0_i32_0 = arith.constant 0 : i32
    %c0_i32_1 = arith.constant 0 : i32
    %c0_i32_2 = arith.constant 0 : i32
    return %arg0, %0, %c0_i32_0, %c0_i32_1 : i32, i32, i32, i32
  }
  func.func @transform_3(%arg0: i32, %arg1: i32) -> (i32, i32, i32, i32) {
    %c1_i32 = arith.constant 1 : i32
    %0 = arith.subi %arg1, %c1_i32 : i32
    %c0_i32 = arith.constant 0 : i32
    %1 = arith.maxsi %0, %c0_i32 : i32
    %c0_i32_0 = arith.constant 0 : i32
    %c0_i32_1 = arith.constant 0 : i32
    %c0_i32_2 = arith.constant 0 : i32
    return %arg0, %1, %c0_i32_0, %c0_i32_1 : i32, i32, i32, i32
  }
  func.func @transform_4(%arg0: i32, %arg1: i32) -> (i32, i32, i32, i32) {
    %c0_i32 = arith.constant 0 : i32
    %c0_i32_0 = arith.constant 0 : i32
    %c0_i32_1 = arith.constant 0 : i32
    return %arg0, %arg1, %c0_i32, %c0_i32_0 : i32, i32, i32, i32
  }
}

</mosaic_0001>

<bundles_post_ra>
// kernel: up_forward.1
= control target key start
LH: loop header
LB: loop body
LE: loop exit
PB: predicated region body
PF: predicated region fallthrough
CT: control target
= control target key end

     0   :  { %s2204_s0 = inlined_call_operand.hbm [shape: f32[16,32], index: 0, kind: input, shape index: {}]   ;;  %s2205_s1 = inlined_call_operand.hbm [shape: f32[32,16], index: 1, kind: input, shape index: {}]   ;;  %s2206_s2 = inlined_call_operand.hbm [shape: f32[2,4,32,32], index: 2, kind: input, shape index: {}]   ;;  %s2207_s3 = inlined_call_operand.hbm [shape: f32[2,4,16,16], index: 3, kind: input, shape index: {}]   ;;  %s2208_s4 = inlined_call_operand.hbm [shape: f32[2,8,32,32], index: 4, kind: output, shape index: {}]  }
   0x1   :  { %2233 = sst [smem:[#allocation24_spill]] %s2204_s0 }
   0x2   :  { %2234 = sst [smem:[#allocation25_spill]] %s2208_s4 }
   0x3   :  { %9 = vsyncpa [#allocation3], 0 }
   0x4   :  { %10 = vsyncpa [#allocation6], 0 }
   0x5   :  { %11 = vsyncpa [#allocation4], 0 }
   0x6   :  { %13 = vsyncpa [#allocation4 + $0x1], 0  ;;  %s1669_s15 = smov 0   ;;  %s1671_s16 = smov 0  }
   0x7   :  { %s1673_s17 = smov 0   ;;  %s1675_s18 = smov 0  }
   0x8   :  { %s1677_s19 = smov 0   ;;  %s1679_s20 = smov 0  }
   0x9   :  { %s1681_s21 = smov 0   ;;  %s1683_s22 = smov 0  }
   0xa   :  { %s1685_s23 = smov 0   ;;  %s1687_s24 = smov 0  }
   0xb   :  { %s1689_s25 = smov 0   ;;  %s1691_s26 = smov 0  }
   0xc   :  { %s1693_s27 = smov 0   ;;  %s1695_s28 = smov 0  }
   0xd LB: > { %2235 = sst [smem:[#allocation15_spill]] %s1581_s15  ;;  %s1736_s29 = sadd.s32 4294967295, %s1633_s28   ;;  %s1633_s28 = sphi %s1695_s28, %s19_s28   ;;  %s1629_s27 = sphi %s1693_s27, %s2299_s27   ;;  %s1625_s26 = sphi %s1691_s26, %s2298_s26   ;;  %s1621_s25 = sphi %s1689_s25, %s2297_s25   ;;  %s1617_s24 = sphi %s1687_s24, %s2296_s24   ;;  %s1613_s23 = sphi %s1685_s23, %s2295_s23   ;;  %s1609_s22 = sphi %s1683_s22, %s2294_s22   ;;  %s1605_s21 = sphi %s1681_s21, %s2293_s21   ;;  %s1601_s20 = sphi %s1679_s20, %s2292_s20   ;;  %s1597_s19 = sphi %s1677_s19, %s2291_s19   ;;  %s1593_s18 = sphi %s1675_s18, %s2290_s18   ;;  %s1589_s17 = sphi %s1673_s17, %s2289_s17   ;;  %s1585_s16 = sphi %s1671_s16, %s2288_s16   ;;  %s1581_s15 = sphi %s1669_s15, %s2287_s15  }
   0xe   : > { %2236 = sst [smem:[#allocation16_spill]] %s1585_s16  ;;  %s1031_s30 = sadd.s32 4294967294, %s1633_s28  }
   0xf   : > { %2237 = sst [smem:[#allocation17_spill]] %s1617_s24  ;;  %p99_p0 = scmp.ne.s32.totalorder %s1609_s22, %s1605_s21 }
  0x10   : > { %2238 = sst [smem:[#allocation18_spill]] %s1621_s25  ;;  %p2210_p1 = scmp.eq.s32.totalorder %s1736_s29, 0 }
  0x11   : > { %p133_p2 = scmp.ne.s32.totalorder %s1597_s19, %s1593_s18  ;;  %p158_p4 = scmp.ne.s32.totalorder %s1589_s17, %s1585_s16 }
  0x12   : > { %p1745_p3 = por %p2210_p1, %p99_p0  ;;  %p159_p6 = scmp.eq.s32.totalorder %s1736_s29, 3 }
  0x13   : > { %p1753_p5 = por %p133_p2, %p2210_p1  ;;  %p164_p7 = scmp.ne.s32.totalorder %s1585_s16, %s1581_s15 }
  0x14   : > { %s2239_s6 = scalar_select %p1745_p3, 1, 0 }
  0x15   : > { %s2240_s7 = scalar_select %p1753_p5, 1, 0 }
  0x16   : > { %p165_p8 = scmp.eq.s32.totalorder %s1031_s30, 3  ;;  %p1760_p9 = por %p159_p6, %p158_p4 }
  0x17   : > { %2241 = sst [smem:[#allocation19_spill]] %s2240_s7  ;;  %p1034_p10 = scmp.ge.s32.totalorder %s1633_s28, 1 }
  0x18   : > { %s2242_s8 = scalar_select %p1760_p9, 1, 0 }
  0x19   : > { %p1765_p11 = por %p165_p8, %p164_p7  ;;  %p172_p12 = scmp.lt.s32.totalorder %s1633_s28, 5 }
  0x1a   : > { %2243 = sst [smem:[#allocation20_spill]] %s2242_s8  ;;  %s1635_s11 = smov [#allocation2]  }
  0x1b   : > { %s2244_s9 = scalar_select %p1765_p11, 1, 0 }
  0x1c   : > { %p1770_p13 = pnand %p1034_p10, %p172_p12  ;;  %s184_s12 = sshll.u32 %s1635_s11, 4  ;;  %s185_s12 = int_to_ptr.vmem [resolvable:$true] %s184_s12 }
  0x1d   : > { %2245 = sst [smem:[#allocation21_spill]] %s2244_s9  ;;  %s2248_s0 = sld [smem:[#allocation24_spill]] }
  0x1e   : > { %s2246_s10 = scalar_select %p1770_p13, 1, 0 }
  0x1f   : > { %p1215_p0 = pneg %p1770_p13 }
  0x21   : > { %p1778_p2 = pnand %p1215_p0, %p2210_p1 }
  0x23   : > { %s1357_s21 = scalar_lea.hbm %s2248_s0, 256  ;;  %p2232_p6 = pneg %p1778_p2 }
  0x24   : > { %p1358_p4 = scmp.ne.s32.totalorder %s2248_s0, %s1357_s21  ;;  %p1364_p10 = scmp.lt.u32.totalorder %s1357_s21, %s2248_s0 }
  0x26   : > { %p1360_p7 = pnand %p2232_p6, %p1358_p4 }
  0x28   : > { %p1361_p8 = pneg %p1360_p7 }
  0x2a   : > { %p1366_p12 = pnand %p1364_p10, %p1361_p8 }
  0x2c   : > { %1369 = shalt.err (!%p1366_p12)
}
  0x2d   : > { %s1370_s14 = scalar_lea.vmem %s185_s12, 256  ;;  %p1378_p9 = scmp.lt.s32.totalorder %s185_s12, %s185_s12 }
  0x2e   : > { %p1371_p0 = scmp.ne.s32.totalorder %s185_s12, %s1370_s14  ;;  %p1379_p5 = scmp.lt.s32.totalorder %s1370_s14, %s1370_s14 }
  0x30   : > { %p1373_p1 = pnand %p1371_p0, %p2232_p6  ;;  %p1380_p3 = por %p1379_p5, %p1378_p9 }
  0x32   : > { %p1374_p11 = pneg %p1373_p1 }
  0x34   : > { %p1381_p13 = pnand %p1380_p3, %p1374_p11 }
  0x36   : > { %1384 = shalt.err (!%p1381_p13)
}
  0x37   : > { %s2215_s5 = smov 128   ;;  %s2217_s9 = smov 8  }
  0x38   : > { %1218 = dma.hbm_to_vmem [thread:$0]  (!%p1778_p2), %s2248_s0, 256, %s185_s12, [#allocation3], %s2215_s5, %s2215_s5, %s2217_s9  }
  0x39   : > { %s28_s30 = sadd.s32 1, %s1625_s26  ;;  %s31_s11 = sadd.s32 1, %s1629_s27 }
  0x3a   : > { %p29_p1 = scmp.ge.s32.totalorder %s28_s30, 2  ;;  %s86_s14 = sadd.s32 1, %s1613_s23 }
  0x3b   : > { %p93_p5 = scmp.ne.s32.totalorder %s1613_s23, %s1609_s22  ;;  %p2231_p9 = scmp.eq.s32.totalorder %s1633_s28, 0 }
  0x3c   : > { %s2301_s30 = smov (%p29_p1, %s28_s30), 0  ;;  %s2303_s11 = smov (!%p29_p1, %s31_s11), %s1629_s27 }
  0x3d   : > { %2249 = sst [smem:[#allocation22_spill]] %s2301_s30  ;;  %p33_p3 = scmp.ge.s32.totalorder %s2303_s11, 2 }
  0x3e   : > { %p1824_p11 = por %p2231_p9, %p93_p5  ;;  %s144_s21 = ssub.s32 %s1625_s26, %s2301_s30 }
  0x3f   : > { %s2305_s11 = smov (%p33_p3, %s2303_s11), 0  ;;  %p2229_p7 = scmp.lt.s32.totalorder %s1633_s28, 4 }
  0x40   : > { %2250 = sst [smem:[#allocation23_spill]] %s2305_s11  ;;  %s1820_s12 = ssub.s32 %s1629_s27, %s2305_s11 }
  0x41   : > { %s145_s5 = sor.u32 %s144_s21, %s1820_s12  ;;  %p2230_p13 = scmp.eq.s32.totalorder %s1820_s12, 0 }
  0x42   : > { %p146_p4 = scmp.eq.s32.totalorder %s145_s5, 0  ;;  %s211_s9 = sand.u32 1, %s1633_s28  }
  0x43   : > { %s1837_s0 = scalar_select %p2230_p13, %s1613_s23, %s86_s14  }
  0x44   : > { %s2252_s11 = sadd.s32 1, %s1589_s17  ;;  %s213_s4 = sand.u32 1, %s1613_s23  }
  0x45   : > { %s1842_s15 = scalar_select %p146_p4, %s1589_s17, %s2252_s11  }
  0x46   : > { %s1038_s8 = sshll.u32 %s213_s4, 7  ;;  %s1577_s16 = sshll.u32 %s1629_s27, 11 }
  0x47   : > { %s215_s25 = scalar_lea.vmem [#allocation7], %s1038_s8  ;;  %s1851_s21 = scalar_lea.hbm %s2206_s2, %s1577_s16 }
  0x48   : > { %s227_s24 = sshll.u32 %s215_s25, 4  ;;  %p1857_p8 = pnand %p2229_p7, %p1824_p11  ;;  %s1846_s24 = int_to_ptr.vmem [resolvable:$true] %s227_s24 }
  0x49   : > { %s1638_s4 = smov [#allocation5]   ;;  %s1863_s8 = scalar_lea.sflag [#allocation3], %s211_s9 }
  0x4a   : > { %s1861_s25 = sshll.u32 %s1638_s4, 4  ;;  %s1385_s7 = scalar_lea.hbm %s1851_s21, 2048  ;;  %s198_s25 = int_to_ptr.vmem [resolvable:$true] %s1861_s25 }
  0x4b   : > { %p1386_p10 = scmp.ne.s32.totalorder %s1851_s21, %s1385_s7  ;;  %p1387_p12 = pneg %p1857_p8 }
  0x4c   : > { %s1390_s11 = scalar_lea.hbm %s2206_s2, 4096  ;;  %p1391_p3 = scmp.lt.u32.totalorder %s1851_s21, %s2206_s2 }
  0x4d   : > { %p1388_p0 = pnand %p1387_p12, %p1386_p10  ;;  %p1392_p5 = scmp.lt.u32.totalorder %s1390_s11, %s1385_s7 }
  0x4e   : > { %p1394_p4 = scmp.lt.u32.totalorder %s1385_s7, %s1851_s21 }
  0x4f   : > { %p1389_p1 = pneg %p1388_p0  ;;  %p1393_p11 = por %p1392_p5, %p1391_p3 }
  0x51   : > { %p1395_p7 = por %p1394_p4, %p1393_p11 }
  0x53   : > { %p1396_p13 = pnand %p1395_p7, %p1389_p1 }
  0x55   : > { %1399 = shalt.err (!%p1396_p13)
}
  0x56   : > { %s1400_s9 = scalar_lea.vmem %s1846_s24, 2048  ;;  %s1639_s4 = smov [#allocation7]  }
  0x57   : > { %p1401_p10 = scmp.ne.s32.totalorder %s1846_s24, %s1400_s9  ;;  %s1405_s16 = sshll.u32 %s1639_s4, 4  ;;  %s1406_s16 = int_to_ptr.vmem [resolvable:$false] %s1405_s16 }
  0x58   : > { %s1407_s30 = scalar_lea.vmem %s1406_s16, 4096  ;;  %p1408_p6 = scmp.lt.s32.totalorder %s1846_s24, %s1406_s16 }
  0x59   : > { %p1403_p0 = pnand %p1401_p10, %p1387_p12  ;;  %p1409_p3 = scmp.lt.s32.totalorder %s1407_s30, %s1400_s9 }
  0x5b   : > { %p1404_p9 = pneg %p1403_p0  ;;  %p1410_p5 = por %p1409_p3, %p1408_p6 }
  0x5d   : > { %p1411_p11 = pnand %p1410_p5, %p1404_p9 }
  0x5f   : > { %1414 = shalt.err (!%p1411_p11)
}
  0x60   : > { %s2254_s7 = smov 8   ;;  %s2255_s11 = smov 128  }
  0x61   : > { %1225 = dma.hbm_to_vmem [thread:$0]  (!%p1857_p8), %s1851_s21, 2048, %s1846_s24, %s1863_s8, %s2255_s11, %s2255_s11, %s2254_s7  }
  0x62   : > { %s1415_s4 = scalar_lea.hbm %s2205_s1, 512  ;;  %p2256_p9 = pneg %p1778_p2 }
  0x63   : > { %p1416_p6 = scmp.ne.s32.totalorder %s2205_s1, %s1415_s4  ;;  %p1422_p12 = scmp.lt.u32.totalorder %s1415_s4, %s2205_s1 }
  0x65   : > { %p1418_p13 = pnand %p1416_p6, %p2256_p9 }
  0x67   : > { %p1419_p7 = pneg %p1418_p13 }
  0x69   : > { %p1424_p1 = pnand %p1422_p12, %p1419_p7 }
  0x6b   : > { %1427 = shalt.err (!%p1424_p1)
}
  0x6c   : > { %s1428_s24 = scalar_lea.vmem %s198_s25, 512  ;;  %p2257_p4 = pmov %p2256_p9 }
  0x6d   : > { %p1429_p8 = scmp.ne.s32.totalorder %s198_s25, %s1428_s24  ;;  %p1436_p3 = scmp.lt.s32.totalorder %s198_s25, %s198_s25 }
  0x6e   : > { %p1437_p5 = scmp.lt.s32.totalorder %s1428_s24, %s1428_s24 }
  0x6f   : > { %p1431_p10 = pnand %p1429_p8, %p2257_p4 }
  0x70   : > { %p1438_p11 = por %p1437_p5, %p1436_p3 }
  0x71   : > { %p1432_p0 = pneg %p1431_p10 }
  0x73   : > { %p1439_p6 = pnand %p1438_p11, %p1432_p0 }
  0x75   : > { %1442 = shalt.err (!%p1439_p6)
}
  0x76   : > { %1221 = dma.hbm_to_vmem [thread:$0]  (!%p1778_p2), %s2205_s1, 512, %s198_s25, [#allocation6], %s2255_s11, %s2255_s11, %s2254_s7  }
  0x77   : > { %s120_s18 = sadd.s32 1, %s1601_s20  ;;  %p127_p9 = scmp.ne.s32.totalorder %s1601_s20, %s1597_s19 }
  0x78   : > { %p2258_p13 = scmp.eq.s32.totalorder %s1633_s28, 0  ;;  %s239_s13 = sand.u32 1, %s1601_s20  }
  0x79   : > { %s1043_s4 = sshll.u32 %s239_s13, 6  ;;  %p2259_p12 = scmp.eq.s32.totalorder %s1820_s12, 0 }
  0x7a   : > { %p129_p7 = por %p127_p9, %p2258_p13  ;;  %s241_s9 = scalar_lea.vmem [#allocation8], %s1043_s4 }
  0x7b   : > { %s254_s16 = sshll.u32 %s241_s9, 4  ;;  %s1578_s30 = sshll.u32 %s1629_s27, 10  ;;  %s1929_s16 = int_to_ptr.vmem [resolvable:$true] %s254_s16 }
  0x7c   : > { %s1927_s5 = scalar_select %p2259_p12, %s1601_s20, %s120_s18  }
  0x7d   : > { %p2260_p1 = scmp.lt.s32.totalorder %s1633_s28, 4  ;;  %s1941_s14 = scalar_lea.hbm %s2207_s3, %s1578_s30 }
  0x7e   : > { %s1443_s12 = scalar_lea.hbm %s1941_s14, 1024  ;;  %s1448_s4 = scalar_lea.hbm %s2207_s3, 2048 }
  0x7f   : > { %p1934_p8 = pnand %p2260_p1, %p129_p7  ;;  %p1444_p2 = scmp.ne.s32.totalorder %s1941_s14, %s1443_s12 }
  0x80   : > { %p1449_p3 = scmp.lt.u32.totalorder %s1941_s14, %s2207_s3  ;;  %p1450_p5 = scmp.lt.u32.totalorder %s1448_s4, %s1443_s12 }
  0x81   : > { %p1445_p4 = pneg %p1934_p8  ;;  %p1452_p6 = scmp.lt.u32.totalorder %s1443_s12, %s1941_s14 }
  0x82   : > { %p1451_p11 = por %p1450_p5, %p1449_p3 }
  0x83   : > { %p1446_p10 = pnand %p1445_p4, %p1444_p2 }
  0x84   : > { %p1453_p9 = por %p1452_p6, %p1451_p11 }
  0x85   : > { %p1447_p0 = pneg %p1446_p10 }
  0x87   : > { %p1454_p13 = pnand %p1453_p9, %p1447_p0 }
  0x89   : > { %1457 = shalt.err (!%p1454_p13)
}
  0x8a   : > { %s1458_s30 = scalar_lea.vmem %s1929_s16, 1024  ;;  %s1640_s21 = smov [#allocation8]  }
  0x8b   : > { %p1459_p7 = scmp.ne.s32.totalorder %s1929_s16, %s1458_s30  ;;  %s1463_s18 = sshll.u32 %s1640_s21, 4  ;;  %s1464_s18 = int_to_ptr.vmem [resolvable:$false] %s1463_s18 }
  0x8c   : > { %s1465_s13 = scalar_lea.vmem %s1464_s18, 2048  ;;  %p1466_p2 = scmp.lt.s32.totalorder %s1929_s16, %s1464_s18 }
  0x8d   : > { %p1461_p12 = pnand %p1459_p7, %p1445_p4  ;;  %p1467_p10 = scmp.lt.s32.totalorder %s1465_s13, %s1458_s30 }
  0x8f   : > { %p1462_p1 = pneg %p1461_p12  ;;  %p1468_p3 = por %p1467_p10, %p1466_p2 }
  0x91   : > { %p1469_p5 = pnand %p1468_p3, %p1462_p1 }
  0x93   : > { %1472 = shalt.err (!%p1469_p5)
}
  0x94   : > { %1228 = dma.hbm_to_vmem [thread:$0]  (!%p1934_p8), %s1941_s14, 1024, %s1929_s16, %s1863_s8, %s2255_s11, %s2255_s11, %s2254_s7  }
  0x95   : > { %p2262_p4 = scmp.ne.s32.totalorder %s2246_s10, 0 }
  0x96   : > { %p2263_p0 = scmp.eq.s32.totalorder (!%p2262_p4), %s1736_s29, 0 }
  0x97   : > { %266 = sbr.rel (%p2262_p4) target bundleno = 691 (0x2b3), region = 36 }
  0x9e   : > { %1558 = dma.done.wait (%p2263_p0), [#allocation3], 256   ;;  %p2264_p11 = pmov %p2263_p0 }
  0x9f   : > { %p2265_p6 = pmov %p2263_p0 }
  0xa0   : > { %1560 = vsyncadd (%p2264_p11), [#allocation3], 4294967040 }
  0xa1   : > { %1562 = dma.done.wait (%p2265_p6), [#allocation6], 512   ;;  %p2266_p9 = pmov %p2263_p0 }
  0xa2   : > { %s276_s24 = sand.u32 1, %s1736_s29   ;;  %s278_s8 = sand.u32 1, %s1609_s22  }
  0xa3   : > { %1564 = vsyncadd (%p2266_p9), [#allocation6], 4294966784  ;;  %s1052_s7 = sshll.u32 %s278_s8, 7  ;;  %s277_s10 = scalar_lea.sflag [#allocation3], %s276_s24 }
  0xa4   : > { %s1984_s11 = scalar_lea.vmem [#allocation7], %s1052_s7  ;;  %p2267_p8 = scmp.ne.s32.totalorder %s2239_s6, 0 }
  0xa6   : > { %1566 = dma.done.wait (%p2267_p8), %s277_s10, 2048  }
  0xa7   : > { %1568 = vsyncadd (%p2267_p8), %s277_s10, 4294965248  ;;  %s2268_s16 = sld [smem:[#allocation19_spill]]  ;;  %s287_s14 = sand.u32 1, %s1597_s19  }
  0xa8   : > { %s1053_s12 = sshll.u32 %s287_s14, 6 }
  0xa9   : > { %s1991_s4 = scalar_lea.vmem [#allocation8], %s1053_s12 }
  0xad   : > { %p2269_p13 = scmp.ne.s32.totalorder %s2268_s16, 0 }
  0xaf   : > { %1570 = dma.done.wait (%p2269_p13), %s277_s10, 1024  }
  0xb0   : > { %1572 = vsyncadd (%p2269_p13), %s277_s10, 4294966272  ;;  %s2270_s29 = sld [smem:[#allocation16_spill]]  ;;  %s2271_s6 = sld [smem:[#allocation17_spill]] }
  0xb6   : > { %s316_s9 = sand.u32 1, %s2270_s29   ;;  %p1055_p7 = scmp.ge.s32.totalorder %s2271_s6, 1 }
  0xb7   : > { %s1054_s25 = sshll.u32 %s316_s9, 7  ;;  %v331_v0 = vld [vmem:[%s1984_s11] sm:$0xff] (!%p1055_p7)  ;;  %vm347_vm0 = vcmask (!%p1055_p7), 261120   ;;  %v332_v1 = vld [vmem:[%s1984_s11 + $0x8] sm:$0xff] (!%p1055_p7)  ;;  %v333_v2 = vld [vmem:[%s1984_s11 + $0x10] sm:$0xff] (!%p1055_p7) }
  0xb8   : > { %s2000_s30 = scalar_lea.vmem [#allocation9], %s1054_s25  ;;  %330 = sbr.rel (%p1055_p7) target bundleno = 193 (0xc1), region = 56  ;;  %v334_v3 = vld [vmem:[%s1984_s11 + $0x18] sm:$0xff] (!%p1055_p7)  ;;  %v335_v4 = vld [vmem:[%s1984_s11 + $0x20] sm:$0xff] (!%p1055_p7)  ;;  %v336_v5 = vld [vmem:[%s1984_s11 + $0x28] sm:$0xff] (!%p1055_p7) }
  0xb9   : > { %348 = vst.msk [vmem:[%s2000_s30] sm:$0xff] (!%p1055_p7), %vm347_vm0, %v331_v0  ;;  %349 = vst.msk [vmem:[%s2000_s30 + $0x8] sm:$0xff] (!%p1055_p7), %vm347_vm0, %v332_v1  ;;  %v337_v6 = vld [vmem:[%s1984_s11 + $0x30] sm:$0xff] (!%p1055_p7)  ;;  %v338_v7 = vld [vmem:[%s1984_s11 + $0x38] sm:$0xff] (!%p1055_p7) }
  0xba   : > { %350 = vst.msk [vmem:[%s2000_s30 + $0x10] sm:$0xff] (!%p1055_p7), %vm347_vm0, %v333_v2  ;;  %351 = vst.msk [vmem:[%s2000_s30 + $0x18] sm:$0xff] (!%p1055_p7), %vm347_vm0, %v334_v3  ;;  %v339_v8 = vld [vmem:[%s1984_s11 + $0x40] sm:$0xff] (!%p1055_p7)  ;;  %v340_v9 = vld [vmem:[%s1984_s11 + $0x48] sm:$0xff] (!%p1055_p7) }
  0xbb   : > { %352 = vst.msk [vmem:[%s2000_s30 + $0x20] sm:$0xff] (!%p1055_p7), %vm347_vm0, %v335_v4  ;;  %353 = vst.msk [vmem:[%s2000_s30 + $0x28] sm:$0xff] (!%p1055_p7), %vm347_vm0, %v336_v5  ;;  %v341_v10 = vld [vmem:[%s1984_s11 + $0x50] sm:$0xff] (!%p1055_p7)  ;;  %v342_v11 = vld [vmem:[%s1984_s11 + $0x58] sm:$0xff] (!%p1055_p7) }
  0xbc   : > { %354 = vst.msk [vmem:[%s2000_s30 + $0x30] sm:$0xff] (!%p1055_p7), %vm347_vm0, %v337_v6  ;;  %355 = vst.msk [vmem:[%s2000_s30 + $0x38] sm:$0xff] (!%p1055_p7), %vm347_vm0, %v338_v7  ;;  %v343_v12 = vld [vmem:[%s1984_s11 + $0x60] sm:$0xff] (!%p1055_p7)  ;;  %v344_v13 = vld [vmem:[%s1984_s11 + $0x68] sm:$0xff] (!%p1055_p7) }
  0xbd   : > { %356 = vst.msk [vmem:[%s2000_s30 + $0x40] sm:$0xff] (!%p1055_p7), %vm347_vm0, %v339_v8  ;;  %357 = vst.msk [vmem:[%s2000_s30 + $0x48] sm:$0xff] (!%p1055_p7), %vm347_vm0, %v340_v9  ;;  %v345_v14 = vld [vmem:[%s1984_s11 + $0x70] sm:$0xff] (!%p1055_p7)  ;;  %v346_v15 = vld [vmem:[%s1984_s11 + $0x78] sm:$0xff] (!%p1055_p7) }
  0xbe   : > { %358 = vst.msk [vmem:[%s2000_s30 + $0x50] sm:$0xff] (!%p1055_p7), %vm347_vm0, %v341_v10  ;;  %359 = vst.msk [vmem:[%s2000_s30 + $0x58] sm:$0xff] (!%p1055_p7), %vm347_vm0, %v342_v11 }
  0xbf   : > { %360 = vst.msk [vmem:[%s2000_s30 + $0x60] sm:$0xff] %vm347_vm0, %v343_v12  ;;  %361 = vst.msk [vmem:[%s2000_s30 + $0x68] sm:$0xff] %vm347_vm0, %v344_v13 }
  0xc0   : > { %362 = vst.msk [vmem:[%s2000_s30 + $0x70] sm:$0xff] %vm347_vm0, %v345_v14  ;;  %363 = vst.msk [vmem:[%s2000_s30 + $0x78] sm:$0xff] %vm347_vm0, %v346_v15 }
  0xc1 PF: > { %s2272_s21 = sld [smem:[#allocation17_spill]] }
  0xc7   : > { %p1056_p12 = scmp.lt.s32.totalorder %s2272_s21, 1 }
  0xc8   : > { %v376_v16 = vld [vmem:[#allocation2] sm:$0xff] (!%p1056_p12)  ;;  %v377_v17 = vld [vmem:[#allocation2 + $0x8] sm:$0xff] (!%p1056_p12)  ;;  %v368_v18 = vld [vmem:[%s1991_s4] sm:$0xff] (!%p1056_p12)  ;;  %vm378_vm1 = vcmask (!%p1056_p12), 130048   ;;  %vm864_vm2 = vcmask (!%p1056_p12), 261120  }
  0xc9   : > { %367 = sbr.rel (%p1056_p12) target bundleno = 660 (0x294), region = 60  ;;  %v1181_v19 = vpack.c.bf16 (!%p1056_p12), %v377_v17, %v376_v16  ;;  %1129 = vmatprep.mubr.msk.f32.mxu0 (!%p1056_p12), %vm378_vm1, %v368_v18  ;;  %v369_v20 = vld [vmem:[%s1991_s4 + $0x8] sm:$0xff] (!%p1056_p12)  ;;  %v370_v21 = vld [vmem:[%s1991_s4 + $0x10] sm:$0xff] (!%p1056_p12)  ;;  %v371_v22 = vld [vmem:[%s1991_s4 + $0x18] sm:$0xff] (!%p1056_p12) }
  0xca   : > { %v372_v23 = vld [vmem:[%s1991_s4 + $0x20] sm:$0xff] (!%p1056_p12)  ;;  %v373_v24 = vld [vmem:[%s1991_s4 + $0x28] sm:$0xff] (!%p1056_p12)  ;;  %v374_v25 = vld [vmem:[%s1991_s4 + $0x30] sm:$0xff] (!%p1056_p12) }
  0xcb   : > { %1182 = vmatprep.subr.bf16.mxu0 (!%p1056_p12), %v1181_v19  ;;  %v375_v26 = vld [vmem:[%s1991_s4 + $0x38] sm:$0xff] (!%p1056_p12)  ;;  %v508_v27 = vld [vmem:[#allocation5] sm:$0xff] (!%p1056_p12)  ;;  %v509_v33 = vld [vmem:[#allocation5 + $0x8] sm:$0xff] (!%p1056_p12) }
  0xcc   : > { %1184 = vmatpush3.bf16.msra.mxu0 (!%p1056_p12), %v1181_v19  ;;  %1145 = vmatprep.mubr.msk.f32.mxu1 (!%p1056_p12), %vm378_vm1, %v508_v27  ;;  %v510_v35 = vld [vmem:[#allocation5 + $0x10] sm:$0xff] (!%p1056_p12)  ;;  %v511_v38 = vld [vmem:[#allocation5 + $0x18] sm:$0xff] (!%p1056_p12) }
  0xcf   : > { %1130 = vmatmul.mubr.msk.f32.vlgmr.msra.gmra.mrb[0].mxu0 (!%p1056_p12), %vm378_vm1, %v369_v20 }
  0xd0   : > { %1132 = vmatprep.mubr.msk.f32.mxu0 %vm378_vm1, %v370_v21 }
  0xd3   : > { %1133 = vmatmul.mubr.msk.f32.gmra.mrb[2].mxu0 %vm378_vm1, %v371_v22 }
  0xd4   : > { %1135 = vmatprep.mubr.msk.f32.mxu0 %vm378_vm1, %v372_v23 }
  0xd7   : > { %1136 = vmatmul.mubr.msk.f32.gmra.mrb[4].mxu0 %vm378_vm1, %v373_v24 }
  0xd8   : > { %1138 = vmatprep.mubr.msk.f32.mxu0 %vm378_vm1, %v374_v25 }
  0xdb   : > { %1139 = vmatmul.mubr.msk.f32.gmra.mrb[6].mxu0 %vm378_vm1, %v375_v26 }
  0xdc   : > { %1165 = vmatprep.mubr.msk.f32.mxu0 %vm378_vm1, %v508_v27 }
 0x1a2   : > { %v1131_v28 = vpop.f32.mrb[0].mxu0 }
 0x1a3   : > { %v469_v29 = vpop.f32.mrb[1].mxu0 }
 0x1a4   : > { %v1185_v30 = vpack.c.bf16 %v1131_v28, %v469_v29 }
 0x1a6   : > { %v1134_v31 = vpop.f32.mrb[2].mxu0  ;;  %1186 = vmatprep.subr.bf16.mxu1 %v1185_v30 }
 0x1a7   : > { %v479_v32 = vpop.f32.mrb[3].mxu0  ;;  %1188 = vmatpush3.bf16.msra.mxu1 %v1185_v30 }
 0x1a8   : > { %v1189_v34 = vpack.c.bf16 %v1134_v31, %v479_v32 }
 0x1aa   : > { %v1137_v36 = vpop.f32.mrb[4].mxu0  ;;  %1190 = vmatprep.subr.bf16.mxu1 %v1189_v34  ;;  %1146 = vmatmul.mubr.msk.f32.vlgmr.msra.gmra.mrb[0].mxu1 %vm378_vm1, %v509_v33 }
 0x1ab   : > { %v489_v37 = vpop.f32.mrb[5].mxu0  ;;  %1192 = vmatpush3.bf16.msra.mxu1 %v1189_v34  ;;  %1148 = vmatprep.mubr.msk.f32.mxu1 %vm378_vm1, %v510_v35 }
 0x1ac   : > { %v1193_v39 = vpack.c.bf16 %v1137_v36, %v489_v37 }
 0x1ae   : > { %1194 = vmatprep.subr.bf16.mxu0 %v1193_v39  ;;  %v1140_v40 = vpop.f32.mrb[6].mxu0  ;;  %1149 = vmatmul.mubr.msk.f32.gmra.mrb[2].mxu1 %vm378_vm1, %v511_v38 }
 0x1af   : > { %1196 = vmatpush3.bf16.msra.mxu0 %v1193_v39  ;;  %v499_v41 = vpop.f32.mrb[7].mxu0  ;;  %1155 = vmatprep.mubr.msk.f32.mxu1 %vm378_vm1, %v508_v27 }
 0x1b0   : > { %v1197_v42 = vpack.c.bf16 %v1140_v40, %v499_v41 }
 0x1b2   : > { %1198 = vmatprep.subr.bf16.mxu1 %v1197_v42  ;;  %1156 = vmatmul.mubr.msk.f32.vlgmr.msra.gmra.mrb[4].mxu1 %vm378_vm1, %v509_v33 }
 0x1b3   : > { %1200 = vmatpush3.bf16.msra.mxu1 %v1197_v42  ;;  %1158 = vmatprep.mubr.msk.f32.mxu1 %vm378_vm1, %v510_v35 }
 0x1b4   : > { %1166 = vmatmul.mubr.msk.f32.vlgmr.msra.gmra.mrb[8].mxu0 %vm378_vm1, %v509_v33 }
 0x1b5   : > { %1168 = vmatprep.mubr.msk.f32.mxu0 %vm378_vm1, %v510_v35 }
 0x1b6   : > { %1159 = vmatmul.mubr.msk.f32.gmra.mrb[6].mxu1 %vm378_vm1, %v511_v38 }
 0x1b7   : > { %1175 = vmatprep.mubr.msk.f32.mxu1 %vm378_vm1, %v508_v27 }
 0x1b8   : > { %1169 = vmatmul.mubr.msk.f32.gmra.mrb[10].mxu0 %vm378_vm1, %v511_v38 }
 0x1ba   : > { %1176 = vmatmul.mubr.msk.f32.vlgmr.msra.gmra.mrb[8].mxu1 %vm378_vm1, %v509_v33 }
 0x1bb   : > { %1178 = vmatprep.mubr.msk.f32.mxu1 %vm378_vm1, %v510_v35 }
 0x1be   : > { %1179 = vmatmul.mubr.msk.f32.gmra.mrb[10].mxu1 %vm378_vm1, %v511_v38 }
 0x27d   : > { %v1147_v43 = vpop.f32.mrb[0].mxu1 }
 0x27e   : > { %866 = vst.msk [vmem:[%s2000_s30 + $0x8] sm:$0xff] %vm864_vm2, %v1147_v43  ;;  %v590_v44 = vpop.f32.mrb[1].mxu1 }
 0x27f   : > { %865 = vst.msk [vmem:[%s2000_s30] sm:$0xff] %vm864_vm2, %v590_v44 }
 0x281   : > { %v1150_v45 = vpop.f32.mrb[2].mxu1 }
 0x282   : > { %868 = vst.msk [vmem:[%s2000_s30 + $0x18] sm:$0xff] %vm864_vm2, %v1150_v45  ;;  %v600_v46 = vpop.f32.mrb[3].mxu1 }
 0x283   : > { %867 = vst.msk [vmem:[%s2000_s30 + $0x10] sm:$0xff] %vm864_vm2, %v600_v46 }
 0x285   : > { %v1157_v47 = vpop.f32.mrb[4].mxu1 }
 0x286   : > { %870 = vst.msk [vmem:[%s2000_s30 + $0x28] sm:$0xff] %vm864_vm2, %v1157_v47  ;;  %v675_v48 = vpop.f32.mrb[5].mxu1 }
 0x287   : > { %869 = vst.msk [vmem:[%s2000_s30 + $0x20] sm:$0xff] %vm864_vm2, %v675_v48  ;;  %v1167_v49 = vpop.f32.mrb[8].mxu0 }
 0x288   : > { %874 = vst.msk [vmem:[%s2000_s30 + $0x48] sm:$0xff] %vm864_vm2, %v1167_v49  ;;  %v760_v50 = vpop.f32.mrb[9].mxu0 }
 0x289   : > { %v1160_v51 = vpop.f32.mrb[6].mxu1  ;;  %873 = vst.msk [vmem:[%s2000_s30 + $0x40] sm:$0xff] %vm864_vm2, %v760_v50 }
 0x28a   : > { %872 = vst.msk [vmem:[%s2000_s30 + $0x38] sm:$0xff] %vm864_vm2, %v1160_v51  ;;  %v685_v52 = vpop.f32.mrb[7].mxu1 }
 0x28b   : > { %871 = vst.msk [vmem:[%s2000_s30 + $0x30] sm:$0xff] %vm864_vm2, %v685_v52  ;;  %v1170_v53 = vpop.f32.mrb[10].mxu0 }
 0x28c   : > { %876 = vst.msk [vmem:[%s2000_s30 + $0x58] sm:$0xff] %vm864_vm2, %v1170_v53  ;;  %v770_v54 = vpop.f32.mrb[11].mxu0 }
 0x28d   : > { %v1177_v55 = vpop.f32.mrb[8].mxu1  ;;  %875 = vst.msk [vmem:[%s2000_s30 + $0x50] sm:$0xff] %vm864_vm2, %v770_v54 }
 0x28e   : > { %878 = vst.msk [vmem:[%s2000_s30 + $0x68] sm:$0xff] %vm864_vm2, %v1177_v55  ;;  %v845_v56 = vpop.f32.mrb[9].mxu1 }
 0x28f   : > { %877 = vst.msk [vmem:[%s2000_s30 + $0x60] sm:$0xff] %vm864_vm2, %v845_v56 }
 0x291   : > { %v1180_v57 = vpop.f32.mrb[10].mxu1 }
 0x292   : > { %880 = vst.msk [vmem:[%s2000_s30 + $0x78] sm:$0xff] %vm864_vm2, %v1180_v57  ;;  %v855_v58 = vpop.f32.mrb[11].mxu1 }
 0x293   : > { %879 = vst.msk [vmem:[%s2000_s30 + $0x70] sm:$0xff] %vm864_vm2, %v855_v58 }
 0x294 PF: > { %s2273_s18 = sld [smem:[#allocation17_spill]]  ;;  %s2274_s13 = sld [smem:[#allocation18_spill]] }
 0x295   : > { %s2276_s8 = sld [smem:[#allocation20_spill]]  ;;  %s898_s11 = sshll.u32 %s2000_s30, 4  ;;  %s2119_s11 = int_to_ptr.vmem [resolvable:$true] %s898_s11 }
 0x296   : > { %s2277_s29 = sld [smem:[#allocation25_spill]]  ;;  %s2128_s6 = scalar_lea.sflag [#allocation4], %s316_s9 }
 0x297   : > { %s1473_s21 = scalar_lea.vmem %s2119_s11, 2048  ;;  %s1641_s30 = smov [#allocation9]  }
 0x298   : > { %p1474_p1 = scmp.ne.s32.totalorder %s2119_s11, %s1473_s21 }
 0x29a   : > { %s1090_s7 = sshll.u32 %s2273_s18, 4  ;;  %s1084_s10 = sshll.u32 %s2274_s13, 5 }
 0x29b   : > { %s895_s16 = sadd.s32 %s1090_s7, %s1084_s10  ;;  %p2278_p2 = scmp.ne.s32.totalorder %s2276_s8, 0 }
 0x29c   : > { %s1085_s14 = sshll.u32 %s895_s16, 7  ;;  %s1477_s18 = sshll.u32 %s1641_s30, 4  ;;  %s1478_s18 = int_to_ptr.vmem [resolvable:$false] %s1477_s18 }
 0x29d   : > { %s2124_s25 = scalar_lea.hbm %s2277_s29, %s1085_s14  ;;  %p1475_p10 = pnand %p1474_p1, %p2278_p2 }
 0x29e   : > { %s1479_s13 = scalar_lea.vmem %s1478_s18, 4096  ;;  %p1480_p5 = scmp.lt.s32.totalorder %s2119_s11, %s1478_s18 }
 0x29f   : > { %p1476_p3 = pneg %p1475_p10  ;;  %p1481_p4 = scmp.lt.s32.totalorder %s1479_s13, %s1473_s21 }
 0x2a1   : > { %p1482_p0 = por %p1481_p4, %p1480_p5 }
 0x2a3   : > { %p1483_p11 = pnand %p1482_p0, %p1476_p3 }
 0x2a5   : > { %1486 = shalt.err (!%p1483_p11)
}
 0x2a6   : > { %s1487_s9 = scalar_lea.hbm %s2124_s25, 2048  ;;  %s1491_s10 = scalar_lea.hbm %s2277_s29, 8192 }
 0x2a7   : > { %p1488_p6 = scmp.ne.s32.totalorder %s2124_s25, %s1487_s9  ;;  %p1492_p13 = scmp.lt.u32.totalorder %s2124_s25, %s2277_s29 }
 0x2a8   : > { %p1493_p7 = scmp.lt.u32.totalorder %s1491_s10, %s1487_s9  ;;  %p1495_p1 = scmp.lt.u32.totalorder %s1487_s9, %s2124_s25 }
 0x2a9   : > { %p1489_p9 = pnand %p1488_p6, %p2278_p2 }
 0x2aa   : > { %p1494_p12 = por %p1493_p7, %p1492_p13 }
 0x2ab   : > { %p1490_p8 = pneg %p1489_p9 }
 0x2ac   : > { %p1496_p10 = por %p1495_p1, %p1494_p12 }
 0x2ae   : > { %p1497_p3 = pnand %p1496_p10, %p1490_p8 }
 0x2b0   : > { %1500 = shalt.err (!%p1497_p3)
}
 0x2b1   : > { %s1642_s12 = smov 128   ;;  %s1643_s4 = smov 8  }
 0x2b2   : > { %1213 = dma.vmem_to_hbm [thread:$0]  (%p2278_p2), %s2119_s11, 2048, %s2124_s25, %s2128_s6, %s1642_s12, %s1642_s12, %s1643_s4  }
 0x2b3 PF: > { %s2279_s21 = sld [smem:[#allocation15_spill]]  ;;  %s2280_s30 = sld [smem:[#allocation21_spill]] }
 0x2b4   : > { %p1238_p5 = scmp.ge.s32.totalorder %s1633_s28, 2 }
 0x2b9   : > { %s913_s18 = sand.u32 1, %s2279_s21   ;;  %p2281_p4 = scmp.ne.s32.totalorder %s2280_s30, 0 }
 0x2ba   : > { %s914_s13 = scalar_lea.sflag [#allocation4], %s913_s18 }
 0x2bb   : > { %p1230_p0 = pnand %p1238_p5, %p2281_p4 }
 0x2bd   : > { %1574 = dma.done.wait (!%p1230_p0), %s914_s13, 2048  }
 0x2be   : > { %1576 = vsyncadd (!%p1230_p0), %s914_s13, 4294965248  ;;  %s19_s28 = sadd.s32 1, %s1633_s28   ;;  %s2283_s24 = sld [smem:[#allocation16_spill]] }
 0x2bf   : > { %p2157_p11 = scmp.ge.s32.totalorder %s19_s28, 6   ;;  %s2284_s8 = smov %s1842_s15 }
 0x2c0   : > { %s2285_s11 = sld [smem:[#allocation22_spill]]  ;;  %s2286_s6 = sld [smem:[#allocation23_spill]] }
 0x2c1   : > { %s2288_s16 = smov %s1589_s17  ;;  %s2289_s17 = smov %s2284_s8 }
 0x2c2   : > { %s2290_s18 = smov %s1597_s19  ;;  %s2291_s19 = smov %s1601_s20 }
 0x2c3   : > { %s2292_s20 = smov %s1927_s5  ;;  %s2293_s21 = smov %s1609_s22 }
 0x2c4   : > { %s2287_s15 = smov %s2283_s24  ;;  %s2294_s22 = smov %s1613_s23 }
 0x2c5   : > { %s2295_s23 = smov %s1837_s0  ;;  %s2296_s24 = smov %s1625_s26 }
 0x2c6   : > { %s2297_s25 = smov %s1629_s27  ;;  %s2298_s26 = smov %s2285_s11 }
 0x2c7   : > { %s2299_s27 = smov %s2286_s6  ;;  %18 = sbr.rel (!%p2157_p11) target bundleno = 13 (0xd), region = 107 }
 0x2ce   :  { %919 = vsyncpa [#allocation3], 1 }
 0x2cf   :  { %921 = vsyncpa [#allocation3 + $0x1], 1 }
 0x2d0   :  { %922 = vsyncpa [#allocation6], 1 }
 0x2d1   :  { %923 = vsyncpa [#allocation4], 1 }
 0x2d2   :  { %925 = vsyncpa [#allocation4 + $0x1], 1 }

</bundles_post_ra>
